<compile_context>
chip_gen: v5e
topology: v5e:2x2
jax: 0.10.0
libtpu: 0.0.40
codegen_flags: <defaults>
</compile_context>

<pallas_src>
import functools

import jax
import jax.numpy as jnp
import numpy as np
from jax.experimental import pallas as pl
from jax.experimental.pallas import tpu as pltpu

EPS = 1e-5          # PyTorch InstanceNorm1d default eps
NEG_SLOPE = 0.01    # PyTorch leaky_relu default negative_slope


def _round_up(a, m):
    return (a + m - 1) // m * m


def _leaky_relu(x):
    return jnp.where(x >= 0, x, NEG_SLOPE * x)


# --------------------------------- kernel -----------------------------------
def resunit_kernel(x_ref, vecs_ref, w_in_ref, w_dil_ref, w_out_ref,
                   rmat_ref, bmat_ref, shmask_ref, out_ref,
                   *, size, dilation, causal, in_ln):
    Cp, N = x_ref.shape                        # N = Bt * Lp (lane-dense slab)
    Chp = w_in_ref.shape[0]

    # ---- parameters, loaded once per grid step ----
    vecs = vecs_ref[...]                       # (Cp, 9) f32
    ln1w, ln1b = vecs[:, 0:1], vecs[:, 1:2]
    b_in = vecs[0:Chp, 2:3]
    ln2w, ln2b = vecs[0:Chp, 3:4], vecs[0:Chp, 4:5]
    b_dil = vecs[0:Chp, 5:6]
    ln3w, ln3b = vecs[0:Chp, 6:7], vecs[0:Chp, 7:8]
    b_out = vecs[:, 8:9]

    w_in = w_in_ref[...]                       # (Chp, Cp)        bf16
    w_cat = w_dil_ref[...]                     # (Chp, size*Chp)  bf16
    w_out = w_out_ref[...]                     # (Cp, Chp)        bf16
    rmat = rmat_ref[...]                       # (N, Btp) f32, masked * 1/L
    bmat = bmat_ref[...]                       # (Btp, N) f32, masked

    def inorm_lrelu(z, w, b):
        # Segmented (per batch element) InstanceNorm over each length-Lp lane
        # block, done as matmuls against masked reduce / broadcast matrices,
        # fused with the affine transform and leaky_relu.  Because bmat is
        # masked, padded lanes come out exactly 0 (correct zero padding for
        # the following dilated conv).
        mean = jnp.dot(z, rmat, preferred_element_type=jnp.float32)      # (r, Btp)
        sqm = jnp.dot(z * z, rmat, preferred_element_type=jnp.float32)   # (r, Btp)
        var = jnp.maximum(sqm - mean * mean, 0.0)
        scale = jax.lax.rsqrt(var + EPS) * w
        shift = b - mean * scale
        y = (z * jnp.dot(scale, bmat, preferred_element_type=jnp.float32)
             + jnp.dot(shift, bmat, preferred_element_type=jnp.float32))
        return _leaky_relu(y)

    # ---- ln1 / leaky_relu on the input slab ----
    if in_ln:
        h0 = inorm_lrelu(x_ref[...].astype(jnp.float32), ln1w, ln1b)
    else:
        h0 = _leaky_relu(x_ref[...].astype(jnp.float32))   # padded lanes stay 0

    # ---- conv_in (1x1 conv == channel matmul) + ln2 + leaky_relu ----
    h = jnp.dot(w_in, h0.astype(jnp.bfloat16),
                preferred_element_type=jnp.float32) + b_in
    h = inorm_lrelu(h, ln2w, ln2b)             # (Chp, N), padded lanes == 0

    # ---- causal / 'same' dilated conv fused into ONE matmul ----
    # Taps = lane-rolled copies of h, zero-filled with precomputed masks,
    # concatenated along sublanes -> MXU contraction dim becomes size*Chp.
    taps = []
    for k in range(size):
        if causal:
            s = dilation * (size - 1 - k)
        else:
            s = dilation * (size - 1) // 2 - k * dilation
        if s == 0:
            t = h
        else:
            t = pltpu.roll(h, shift=s % N, axis=1) * shmask_ref[k]
        taps.append(t.astype(jnp.bfloat16))
    h_cat = taps[0] if size == 1 else jnp.concatenate(taps, axis=0)
    acc = jnp.dot(w_cat, h_cat, preferred_element_type=jnp.float32) + b_dil

    # ---- ln3 / leaky_relu, conv_out, residual ----
    g = inorm_lrelu(acc, ln3w, ln3b)
    y = jnp.dot(w_out, g.astype(jnp.bfloat16),
                preferred_element_type=jnp.float32) + b_out
    # Re-read the input block for the residual (short live range).
    out_ref[...] = (y + x_ref[...].astype(jnp.float32)).astype(out_ref.dtype)


# -------------------------------- wrapper ------------------------------------
def _tpu_vmem_capacity():
    try:
        return int(pltpu.get_tpu_info().vmem_capacity_bytes)
    except Exception:
        return 64 << 20                         # conservative fallback (v7x-like)


def _choose_bt(B, Cp, Chp, Lp, size, itemsize, big_vmem):
    # Rough per-batch-element VMEM footprint of one grid step.
    per_b = Lp * (2 * 2 * Cp * itemsize         # double-buffered in/out blocks
                  + 5 * max(Cp, Chp) * 4        # live f32 intermediates
                  + (size + 2) * Chp * 2)       # bf16 taps + concat
    budget = (56 << 20) if big_vmem else (20 << 20)
    bt_max = min(max(1, budget // max(per_b, 1)), 8)   # cap: reduce/bcast matmuls grow ~Bt^2
    divs = [d for d in range(1, B + 1) if B % d == 0 and d <= bt_max]
    if not divs:
        return 1
    if big_vmem:
        return max(divs)                        # single TC: fewest grid steps
    even = [d for d in divs if (B // d) % 2 == 0]
    return max(even) if even else max(divs)     # 2 TCs: prefer an even grid


def resunit_forward(x, params, *, size=3, dilation=1, causal=True, in_ln=True):
    B, C, L = x.shape
    Ch = C // 2

    Lp = _round_up(max(L, 1), 128)              # lane-dense length
    Cp = _round_up(C, 16)                       # dense sublanes (bf16-friendly)
    Chp = _round_up(Ch, 16)

    vmem_cap = _tpu_vmem_capacity()
    big_vmem = vmem_cap >= (100 << 20)          # v5e/v6e: 128 MiB, v7x: 64 MiB
    Bt = _choose_bt(B, Cp, Chp, Lp, size, x.dtype.itemsize, big_vmem)
    steps = B // Bt
    N = Bt * Lp
    Btp = _round_up(Bt, 8)

    # TODO(synk): tile the length axis too for very long sequences that
    # overflow VMEM even at Bt=1.

    # ---- input slab: channels on sublanes, batch folded into lanes ----
    xp = jnp.pad(x, ((0, 0), (0, Cp - C), (0, Lp - L)))
    x_slab = jnp.transpose(xp, (1, 0, 2)).reshape(Cp, B * Lp)

    # ---- per-channel vectors packed into one (Cp, 9) block ----
    def col(v):
        v = jnp.asarray(v, jnp.float32).reshape(-1)
        return jnp.pad(v, (0, Cp - v.shape[0]))

    ln1_w = params.get("ln1_w", jnp.ones((C,), jnp.float32))
    ln1_b = params.get("ln1_b", jnp.zeros((C,), jnp.float32))
    vecs = jnp.stack([
        col(ln1_w), col(ln1_b),
        col(params["b_in"]), col(params["ln2_w"]), col(params["ln2_b"]),
        col(params["b_dil"]), col(params["ln3_w"]), col(params["ln3_b"]),
        col(params["b_out"]),
    ], axis=1)                                                 # (Cp, 9) f32

    # ---- weights (bf16).  Dilated taps concatenated -> one K=size*Chp matmul.
    def pad2(w, r, c):
        w = jnp.asarray(w, jnp.float32)
        return jnp.pad(w, ((0, r - w.shape[0]), (0, c - w.shape[1])))

    w_in = pad2(jnp.asarray(params["w_in"], jnp.float32).reshape(Ch, C),
                Chp, Cp).astype(jnp.bfloat16)
    w_out = pad2(jnp.asarray(params["w_out"], jnp.float32).reshape(C, Ch),
                 Cp, Chp).astype(jnp.bfloat16)
    w_dil = jnp.asarray(params["w_dil"], jnp.float32)          # (Ch, Ch, size)
    w_cat = jnp.concatenate([pad2(w_dil[:, :, k], Chp, Chp) for k in range(size)],
                            axis=1).astype(jnp.bfloat16)       # (Chp, size*Chp)

    # ---- masked reduce / broadcast matrices + shift masks (host precomputed,
    # shared by every grid step; grid blocks all have the same segment layout).
    lane = np.arange(N)
    seg = lane // Lp
    loc = lane % Lp
    valid = (loc < L).astype(np.float32)
    bmat_np = np.zeros((Btp, N), np.float32)
    bmat_np[seg, lane] = valid
    rmat_np = bmat_np.T * np.float32(1.0 / L)

    shm_np = np.ones((size, 1, N), np.float32)
    for k in range(size):
        s = dilation * (size - 1 - k) if causal \
            else dilation * (size - 1) // 2 - k * dilation
        if s > 0:
            shm_np[k, 0, :] = (loc >= s).astype(np.float32)
        elif s < 0:
            shm_np[k, 0, :] = (loc < Lp + s).astype(np.float32)

    rmat = jnp.asarray(rmat_np)                                # (N, Btp) f32
    bmat = jnp.asarray(bmat_np)                                # (Btp, N) f32
    shmask = jnp.asarray(shm_np)                               # (size, 1, N) f32

    kern = functools.partial(resunit_kernel, size=size, dilation=dilation,
                             causal=causal, in_ln=in_ln)

    in_specs = [
        pl.BlockSpec((Cp, N), lambda g: (0, g)),               # input slab tile
        pl.BlockSpec((Cp, 9), lambda g: (0, 0)),               # packed vectors
        pl.BlockSpec((Chp, Cp), lambda g: (0, 0)),             # conv_in weight
        pl.BlockSpec((Chp, size * Chp), lambda g: (0, 0)),     # dilated (concat)
        pl.BlockSpec((Cp, Chp), lambda g: (0, 0)),             # conv_out weight
        pl.BlockSpec((N, Btp), lambda g: (0, 0)),              # reduce matrix
        pl.BlockSpec((Btp, N), lambda g: (0, 0)),              # broadcast matrix
        pl.BlockSpec((size, 1, N), lambda g: (0, 0, 0)),       # shift masks
    ]
    out_specs = pl.BlockSpec((Cp, N), lambda g: (0, g))

    # Generation-aware VMEM limit (double-buffered I/O + live intermediates).
    per_step = (2 * 2 * Cp * N * x.dtype.itemsize
                + 5 * max(Cp, Chp) * N * 4
                + (size + 2) * Chp * N * 2
                + (Cp * 9 + 2 * N * Btp + size * N) * 4
                + (Chp * Cp + Chp * size * Chp + Cp * Chp) * 2)
    cap = (96 << 20) if big_vmem else (44 << 20)
    vmem_limit = int(min(max(2 * per_step, 32 << 20), cap))

    cost = pl.CostEstimate(
        flops=int(2 * B * Lp * Chp * (Cp + size * Chp + Cp)
                  + 3 * 8 * B * Lp * max(Cp, Chp) * Btp),
        transcendentals=int(B * (Cp + 2 * Chp)),
        bytes_accessed=int(2 * Cp * B * Lp * x.dtype.itemsize
                           + (Chp * Cp + Chp * size * Chp + Cp * Chp) * 2
                           + 2 * N * Btp * 4))

    out_slab = pl.pallas_call(
        kern,
        out_shape=jax.ShapeDtypeStruct((Cp, B * Lp), x.dtype),
        grid=(steps,),
        in_specs=in_specs,
        out_specs=out_specs,
        compiler_params=pltpu.CompilerParams(
            dimension_semantics=("parallel",),
            vmem_limit_bytes=vmem_limit,
        ),
        cost_estimate=cost,
    )(x_slab, vecs, w_in, w_cat, w_out, rmat, bmat, shmask)

    # Un-slab: (Cp, B*Lp) -> (B, C, L); padded channels/lanes are sliced away.
    out = out_slab.reshape(Cp, B, Lp).transpose(1, 0, 2)
    return out[:, :C, :L]


# ---------------------- pure-JAX reference (for checking) -------------------
def resunit_ref(x, params, *, size=3, dilation=1, causal=True, in_ln=True):
    def inorm(h, w, b):
        m = h.mean(-1, keepdims=True)
        v = ((h - m) ** 2).mean(-1, keepdims=True)
        return (h - m) / jnp.sqrt(v + EPS) * w[None, :, None] + b[None, :, None]

    def lrelu(h):
        return jnp.where(h >= 0, h, NEG_SLOPE * h)

    h = x
    if in_ln:
        h = inorm(h, params["ln1_w"], params["ln1_b"])
    h = lrelu(h)
    h = jnp.einsum("oc,bcl->bol", params["w_in"][:, :, 0], h) + params["b_in"][None, :, None]
    h = lrelu(inorm(h, params["ln2_w"], params["ln2_b"]))

    pad = dilation * (size - 1) if causal else dilation * (size - 1) // 2
    hp = jnp.pad(h, ((0, 0), (0, 0), (pad, pad)))
    Lout = hp.shape[-1] - dilation * (size - 1)
    acc = jnp.zeros((x.shape[0], params["w_dil"].shape[0], Lout), jnp.float32)
    for k in range(size):
        acc = acc + jnp.einsum("oc,bcl->bol", params["w_dil"][:, :, k],
                               hp[:, :, k * dilation:k * dilation + Lout])
    acc = acc + params["b_dil"][None, :, None]
    if causal and size > 1:
        acc = acc[:, :, : -dilation * (size - 1)]
    g = lrelu(inorm(acc, params["ln3_w"], params["ln3_b"]))
    y = jnp.einsum("oc,bcl->bol", params["w_out"][:, :, 0], g) + params["b_out"][None, :, None]
    return y + x


# ---------------------------------- main -------------------------------------
if __name__ == "__main__":
    def make_params(key, C, Ch, size):
        ks = jax.random.split(key, 6)
        return {
            "ln1_w": jnp.ones((C,), jnp.float32),
            "ln1_b": jnp.zeros((C,), jnp.float32),
            "w_in": 0.3 * jax.random.normal(ks[0], (Ch, C, 1), jnp.float32),
            "b_in": 0.1 * jax.random.normal(ks[1], (Ch,), jnp.float32),
            "ln2_w": jnp.ones((Ch,), jnp.float32),
            "ln2_b": jnp.zeros((Ch,), jnp.float32),
            "w_dil": 0.3 * jax.random.normal(ks[2], (Ch, Ch, size), jnp.float32),
            "b_dil": 0.1 * jax.random.normal(ks[3], (Ch,), jnp.float32),
            "ln3_w": jnp.ones((Ch,), jnp.float32),
            "ln3_b": jnp.zeros((Ch,), jnp.float32),
            "w_out": 0.3 * jax.random.normal(ks[4], (C, Ch, 1), jnp.float32),
            "b_out": 0.1 * jax.random.normal(ks[5], (C,), jnp.float32),
        }

    key = jax.random.PRNGKey(0)
    k1, k2, k3, k4 = jax.random.split(key, 4)

    # Config 1: module defaults at small shapes.
    B, C, L, size, dilation, causal, in_ln = 2, 4, 16, 3, 1, True, True
    params = make_params(k1, C, C // 2, size)
    x = jax.random.normal(k2, (B, C, L), jnp.float32)
    out = jax.block_until_ready(
        resunit_forward(x, params, size=size, dilation=dilation,
                        causal=causal, in_ln=in_ln))
    ref = resunit_ref(x, params, size=size, dilation=dilation,
                      causal=causal, in_ln=in_ln)
    np.testing.assert_allclose(np.asarray(out), np.asarray(ref),
                               rtol=5e-2, atol=5e-2)

    # Config 2: exercises channel/length padding, dilation>1 and in_ln=False.
    B, C, L, size, dilation, causal, in_ln = 3, 6, 40, 3, 2, True, False
    params = make_params(k3, C, C // 2, size)
    x = jax.random.normal(k4, (B, C, L), jnp.float32)
    out = jax.block_until_ready(
        resunit_forward(x, params, size=size, dilation=dilation,
                        causal=causal, in_ln=in_ln))
    ref = resunit_ref(x, params, size=size, dilation=dilation,
                      causal=causal, in_ln=in_ln)
    np.testing.assert_allclose(np.asarray(out), np.asarray(ref),
                               rtol=5e-2, atol=5e-2)

    print("KERNEL_OK")
</pallas_src>

<mosaic_0001>
module attributes {stable_mosaic.version = 11 : i64} {
  func.func @resunit_kernel(%arg0: i32, %arg1: memref<16x128xf32, #tpu.memory_space<vmem>>, %arg2: memref<16x9xf32, #tpu.memory_space<vmem>>, %arg3: memref<16x16xbf16, #tpu.memory_space<vmem>>, %arg4: memref<16x48xbf16, #tpu.memory_space<vmem>>, %arg5: memref<16x16xbf16, #tpu.memory_space<vmem>>, %arg6: memref<128x8xf32, #tpu.memory_space<vmem>>, %arg7: memref<8x128xf32, #tpu.memory_space<vmem>>, %arg8: memref<3x1x128xf32, #tpu.memory_space<vmem>>, %arg9: memref<16x128xf32, #tpu.memory_space<vmem>>) attributes {dimension_semantics = [#tpu.dimension_semantics<parallel>], iteration_bounds = array<i64: 2>, scalar_prefetch = 0 : i64, scratch_operands = 0 : i64, tpu.core_type = #tpu.core_type<tc>, window_params = [{transform_indices = @transform_0, window_bounds = array<i64: 16, 128>}, {pipeline_mode = #tpu.pipeline_mode<synchronous>, transform_indices = @transform_1, window_bounds = array<i64: 16, 9>}, {pipeline_mode = #tpu.pipeline_mode<synchronous>, transform_indices = @transform_2, window_bounds = array<i64: 16, 16>}, {pipeline_mode = #tpu.pipeline_mode<synchronous>, transform_indices = @transform_3, window_bounds = array<i64: 16, 48>}, {pipeline_mode = #tpu.pipeline_mode<synchronous>, transform_indices = @transform_4, window_bounds = array<i64: 16, 16>}, {pipeline_mode = #tpu.pipeline_mode<synchronous>, transform_indices = @transform_5, window_bounds = array<i64: 128, 8>}, {pipeline_mode = #tpu.pipeline_mode<synchronous>, transform_indices = @transform_6, window_bounds = array<i64: 8, 128>}, {pipeline_mode = #tpu.pipeline_mode<synchronous>, transform_indices = @transform_7, window_bounds = array<i64: 3, 1, 128>}, {transform_indices = @transform_8, window_bounds = array<i64: 16, 128>}]} {
    %c0 = arith.constant 0 : index
    %c0_0 = arith.constant 0 : index
    %0 = vector.load %arg2[%c0, %c0_0] : memref<16x9xf32, #tpu.memory_space<vmem>>, vector<16x9xf32>
    %1 = vector.extract_strided_slice %0 {offsets = [0, 0], sizes = [16, 1], strides = [1, 1]} : vector<16x9xf32> to vector<16x1xf32>
    %2 = vector.extract_strided_slice %0 {offsets = [0, 1], sizes = [16, 1], strides = [1, 1]} : vector<16x9xf32> to vector<16x1xf32>
    %3 = vector.extract_strided_slice %0 {offsets = [0, 2], sizes = [16, 1], strides = [1, 1]} : vector<16x9xf32> to vector<16x1xf32>
    %4 = vector.extract_strided_slice %0 {offsets = [0, 3], sizes = [16, 1], strides = [1, 1]} : vector<16x9xf32> to vector<16x1xf32>
    %5 = vector.extract_strided_slice %0 {offsets = [0, 4], sizes = [16, 1], strides = [1, 1]} : vector<16x9xf32> to vector<16x1xf32>
    %6 = vector.extract_strided_slice %0 {offsets = [0, 5], sizes = [16, 1], strides = [1, 1]} : vector<16x9xf32> to vector<16x1xf32>
    %7 = vector.extract_strided_slice %0 {offsets = [0, 6], sizes = [16, 1], strides = [1, 1]} : vector<16x9xf32> to vector<16x1xf32>
    %8 = vector.extract_strided_slice %0 {offsets = [0, 7], sizes = [16, 1], strides = [1, 1]} : vector<16x9xf32> to vector<16x1xf32>
    %9 = vector.extract_strided_slice %0 {offsets = [0, 8], sizes = [16, 1], strides = [1, 1]} : vector<16x9xf32> to vector<16x1xf32>
    %c0_1 = arith.constant 0 : index
    %c0_2 = arith.constant 0 : index
    %10 = vector.load %arg3[%c0_1, %c0_2] : memref<16x16xbf16, #tpu.memory_space<vmem>>, vector<16x16xbf16>
    %c0_3 = arith.constant 0 : index
    %c0_4 = arith.constant 0 : index
    %11 = vector.load %arg4[%c0_3, %c0_4] : memref<16x48xbf16, #tpu.memory_space<vmem>>, vector<16x48xbf16>
    %c0_5 = arith.constant 0 : index
    %c0_6 = arith.constant 0 : index
    %12 = vector.load %arg5[%c0_5, %c0_6] : memref<16x16xbf16, #tpu.memory_space<vmem>>, vector<16x16xbf16>
    %c0_7 = arith.constant 0 : index
    %c0_8 = arith.constant 0 : index
    %13 = vector.load %arg6[%c0_7, %c0_8] : memref<128x8xf32, #tpu.memory_space<vmem>>, vector<128x8xf32>
    %c0_9 = arith.constant 0 : index
    %c0_10 = arith.constant 0 : index
    %14 = vector.load %arg7[%c0_9, %c0_10] : memref<8x128xf32, #tpu.memory_space<vmem>>, vector<8x128xf32>
    %c0_11 = arith.constant 0 : index
    %c0_12 = arith.constant 0 : index
    %15 = vector.load %arg1[%c0_11, %c0_12] : memref<16x128xf32, #tpu.memory_space<vmem>>, vector<16x128xf32>
    %cst = arith.constant dense<0.000000e+00> : vector<16x8xf32>
    %16 = tpu.matmul %15, %13, %cst {dimension_numbers = #tpu.dot_dimension_numbers<[1], [0], [0], [1], [0, 0, 1, 1], [], []>} : vector<16x128xf32>, vector<128x8xf32>, vector<16x8xf32> -> vector<16x8xf32>
    %17 = arith.mulf %15, %15 : vector<16x128xf32>
    %cst_13 = arith.constant dense<0.000000e+00> : vector<16x8xf32>
    %18 = tpu.matmul %17, %13, %cst_13 {dimension_numbers = #tpu.dot_dimension_numbers<[1], [0], [0], [1], [0, 0, 1, 1], [], []>} : vector<16x128xf32>, vector<128x8xf32>, vector<16x8xf32> -> vector<16x8xf32>
    %19 = arith.mulf %16, %16 : vector<16x8xf32>
    %20 = arith.subf %18, %19 : vector<16x8xf32>
    %cst_14 = arith.constant 0.000000e+00 : f32
    %21 = vector.broadcast %cst_14 : f32 to vector<16x8xf32>
    %22 = arith.maximumf %20, %21 : vector<16x8xf32>
    %cst_15 = arith.constant 9.99999974E-6 : f32
    %23 = vector.broadcast %cst_15 : f32 to vector<16x8xf32>
    %24 = arith.addf %22, %23 : vector<16x8xf32>
    %25 = math.rsqrt %24 : vector<16x8xf32>
    %26 = vector.broadcast %1 : vector<16x1xf32> to vector<16x8xf32>
    %27 = arith.mulf %25, %26 : vector<16x8xf32>
    %28 = arith.mulf %16, %27 : vector<16x8xf32>
    %29 = vector.broadcast %2 : vector<16x1xf32> to vector<16x8xf32>
    %30 = arith.subf %29, %28 : vector<16x8xf32>
    %cst_16 = arith.constant dense<0.000000e+00> : vector<16x128xf32>
    %31 = tpu.matmul %27, %14, %cst_16 {dimension_numbers = #tpu.dot_dimension_numbers<[1], [0], [0], [1], [0, 0, 1, 1], [], []>} : vector<16x8xf32>, vector<8x128xf32>, vector<16x128xf32> -> vector<16x128xf32>
    %32 = arith.mulf %15, %31 : vector<16x128xf32>
    %cst_17 = arith.constant dense<0.000000e+00> : vector<16x128xf32>
    %33 = tpu.matmul %30, %14, %cst_17 {dimension_numbers = #tpu.dot_dimension_numbers<[1], [0], [0], [1], [0, 0, 1, 1], [], []>} : vector<16x8xf32>, vector<8x128xf32>, vector<16x128xf32> -> vector<16x128xf32>
    %34 = arith.addf %32, %33 : vector<16x128xf32>
    %cst_18 = arith.constant 0.000000e+00 : f32
    %35 = vector.broadcast %cst_18 : f32 to vector<16x128xf32>
    %36 = arith.cmpf oge, %34, %35 : vector<16x128xf32>
    %cst_19 = arith.constant 0.00999999977 : f32
    %37 = vector.broadcast %cst_19 : f32 to vector<16x128xf32>
    %38 = arith.mulf %37, %34 : vector<16x128xf32>
    %39 = arith.select %36, %34, %38 : vector<16x128xi1>, vector<16x128xf32>
    %40 = arith.truncf %39 : vector<16x128xf32> to vector<16x128xbf16>
    %cst_20 = arith.constant dense<0.000000e+00> : vector<16x128xf32>
    %41 = tpu.matmul %10, %40, %cst_20 {dimension_numbers = #tpu.dot_dimension_numbers<[1], [0], [0], [1], [0, 0, 1, 1], [], []>} : vector<16x16xbf16>, vector<16x128xbf16>, vector<16x128xf32> -> vector<16x128xf32>
    %42 = vector.broadcast %3 : vector<16x1xf32> to vector<16x128xf32>
    %43 = arith.addf %41, %42 : vector<16x128xf32>
    %cst_21 = arith.constant dense<0.000000e+00> : vector<16x8xf32>
    %44 = tpu.matmul %43, %13, %cst_21 {dimension_numbers = #tpu.dot_dimension_numbers<[1], [0], [0], [1], [0, 0, 1, 1], [], []>} : vector<16x128xf32>, vector<128x8xf32>, vector<16x8xf32> -> vector<16x8xf32>
    %45 = arith.mulf %43, %43 : vector<16x128xf32>
    %cst_22 = arith.constant dense<0.000000e+00> : vector<16x8xf32>
    %46 = tpu.matmul %45, %13, %cst_22 {dimension_numbers = #tpu.dot_dimension_numbers<[1], [0], [0], [1], [0, 0, 1, 1], [], []>} : vector<16x128xf32>, vector<128x8xf32>, vector<16x8xf32> -> vector<16x8xf32>
    %47 = arith.mulf %44, %44 : vector<16x8xf32>
    %48 = arith.subf %46, %47 : vector<16x8xf32>
    %cst_23 = arith.constant 0.000000e+00 : f32
    %49 = vector.broadcast %cst_23 : f32 to vector<16x8xf32>
    %50 = arith.maximumf %48, %49 : vector<16x8xf32>
    %cst_24 = arith.constant 9.99999974E-6 : f32
    %51 = vector.broadcast %cst_24 : f32 to vector<16x8xf32>
    %52 = arith.addf %50, %51 : vector<16x8xf32>
    %53 = math.rsqrt %52 : vector<16x8xf32>
    %54 = vector.broadcast %4 : vector<16x1xf32> to vector<16x8xf32>
    %55 = arith.mulf %53, %54 : vector<16x8xf32>
    %56 = arith.mulf %44, %55 : vector<16x8xf32>
    %57 = vector.broadcast %5 : vector<16x1xf32> to vector<16x8xf32>
    %58 = arith.subf %57, %56 : vector<16x8xf32>
    %cst_25 = arith.constant dense<0.000000e+00> : vector<16x128xf32>
    %59 = tpu.matmul %55, %14, %cst_25 {dimension_numbers = #tpu.dot_dimension_numbers<[1], [0], [0], [1], [0, 0, 1, 1], [], []>} : vector<16x8xf32>, vector<8x128xf32>, vector<16x128xf32> -> vector<16x128xf32>
    %60 = arith.mulf %43, %59 : vector<16x128xf32>
    %cst_26 = arith.constant dense<0.000000e+00> : vector<16x128xf32>
    %61 = tpu.matmul %58, %14, %cst_26 {dimension_numbers = #tpu.dot_dimension_numbers<[1], [0], [0], [1], [0, 0, 1, 1], [], []>} : vector<16x8xf32>, vector<8x128xf32>, vector<16x128xf32> -> vector<16x128xf32>
    %62 = arith.addf %60, %61 : vector<16x128xf32>
    %cst_27 = arith.constant 0.000000e+00 : f32
    %63 = vector.broadcast %cst_27 : f32 to vector<16x128xf32>
    %64 = arith.cmpf oge, %62, %63 : vector<16x128xf32>
    %cst_28 = arith.constant 0.00999999977 : f32
    %65 = vector.broadcast %cst_28 : f32 to vector<16x128xf32>
    %66 = arith.mulf %65, %62 : vector<16x128xf32>
    %67 = arith.select %64, %62, %66 : vector<16x128xi1>, vector<16x128xf32>
    %c2_i32 = arith.constant 2 : i32
    %68 = tpu.dynamic_rotate %67 by %c2_i32 dim 1 : vector<16x128xf32>, i32 -> vector<16x128xf32>
    %c0_29 = arith.constant 0 : index
    %c0_30 = arith.constant 0 : index
    %c0_31 = arith.constant 0 : index
    %69 = vector.load %arg8[%c0_29, %c0_30, %c0_31] : memref<3x1x128xf32, #tpu.memory_space<vmem>>, vector<1x1x128xf32>
    %70 = vector.shape_cast %69 : vector<1x1x128xf32> to vector<1x128xf32>
    %71 = vector.broadcast %70 : vector<1x128xf32> to vector<16x128xf32>
    %72 = arith.mulf %68, %71 : vector<16x128xf32>
    %73 = arith.truncf %72 : vector<16x128xf32> to vector<16x128xbf16>
    %c1_i32 = arith.constant 1 : i32
    %74 = tpu.dynamic_rotate %67 by %c1_i32 dim 1 : vector<16x128xf32>, i32 -> vector<16x128xf32>
    %c1 = arith.constant 1 : index
    %c0_32 = arith.constant 0 : index
    %c0_33 = arith.constant 0 : index
    %75 = vector.load %arg8[%c1, %c0_32, %c0_33] : memref<3x1x128xf32, #tpu.memory_space<vmem>>, vector<1x1x128xf32>
    %76 = vector.shape_cast %75 : vector<1x1x128xf32> to vector<1x128xf32>
    %77 = vector.broadcast %76 : vector<1x128xf32> to vector<16x128xf32>
    %78 = arith.mulf %74, %77 : vector<16x128xf32>
    %79 = arith.truncf %78 : vector<16x128xf32> to vector<16x128xbf16>
    %80 = arith.truncf %67 : vector<16x128xf32> to vector<16x128xbf16>
    %81 = tpu.concatenate %73, %79, %80 in 0 : vector<16x128xbf16>, vector<16x128xbf16>, vector<16x128xbf16> -> vector<48x128xbf16>
    %cst_34 = arith.constant dense<0.000000e+00> : vector<16x128xf32>
    %82 = tpu.matmul %11, %81, %cst_34 {dimension_numbers = #tpu.dot_dimension_numbers<[1], [0], [0], [1], [0, 0, 1, 1], [], []>} : vector<16x48xbf16>, vector<48x128xbf16>, vector<16x128xf32> -> vector<16x128xf32>
    %83 = vector.broadcast %6 : vector<16x1xf32> to vector<16x128xf32>
    %84 = arith.addf %82, %83 : vector<16x128xf32>
    %cst_35 = arith.constant dense<0.000000e+00> : vector<16x8xf32>
    %85 = tpu.matmul %84, %13, %cst_35 {dimension_numbers = #tpu.dot_dimension_numbers<[1], [0], [0], [1], [0, 0, 1, 1], [], []>} : vector<16x128xf32>, vector<128x8xf32>, vector<16x8xf32> -> vector<16x8xf32>
    %86 = arith.mulf %84, %84 : vector<16x128xf32>
    %cst_36 = arith.constant dense<0.000000e+00> : vector<16x8xf32>
    %87 = tpu.matmul %86, %13, %cst_36 {dimension_numbers = #tpu.dot_dimension_numbers<[1], [0], [0], [1], [0, 0, 1, 1], [], []>} : vector<16x128xf32>, vector<128x8xf32>, vector<16x8xf32> -> vector<16x8xf32>
    %88 = arith.mulf %85, %85 : vector<16x8xf32>
    %89 = arith.subf %87, %88 : vector<16x8xf32>
    %cst_37 = arith.constant 0.000000e+00 : f32
    %90 = vector.broadcast %cst_37 : f32 to vector<16x8xf32>
    %91 = arith.maximumf %89, %90 : vector<16x8xf32>
    %cst_38 = arith.constant 9.99999974E-6 : f32
    %92 = vector.broadcast %cst_38 : f32 to vector<16x8xf32>
    %93 = arith.addf %91, %92 : vector<16x8xf32>
    %94 = math.rsqrt %93 : vector<16x8xf32>
    %95 = vector.broadcast %7 : vector<16x1xf32> to vector<16x8xf32>
    %96 = arith.mulf %94, %95 : vector<16x8xf32>
    %97 = arith.mulf %85, %96 : vector<16x8xf32>
    %98 = vector.broadcast %8 : vector<16x1xf32> to vector<16x8xf32>
    %99 = arith.subf %98, %97 : vector<16x8xf32>
    %cst_39 = arith.constant dense<0.000000e+00> : vector<16x128xf32>
    %100 = tpu.matmul %96, %14, %cst_39 {dimension_numbers = #tpu.dot_dimension_numbers<[1], [0], [0], [1], [0, 0, 1, 1], [], []>} : vector<16x8xf32>, vector<8x128xf32>, vector<16x128xf32> -> vector<16x128xf32>
    %101 = arith.mulf %84, %100 : vector<16x128xf32>
    %cst_40 = arith.constant dense<0.000000e+00> : vector<16x128xf32>
    %102 = tpu.matmul %99, %14, %cst_40 {dimension_numbers = #tpu.dot_dimension_numbers<[1], [0], [0], [1], [0, 0, 1, 1], [], []>} : vector<16x8xf32>, vector<8x128xf32>, vector<16x128xf32> -> vector<16x128xf32>
    %103 = arith.addf %101, %102 : vector<16x128xf32>
    %cst_41 = arith.constant 0.000000e+00 : f32
    %104 = vector.broadcast %cst_41 : f32 to vector<16x128xf32>
    %105 = arith.cmpf oge, %103, %104 : vector<16x128xf32>
    %cst_42 = arith.constant 0.00999999977 : f32
    %106 = vector.broadcast %cst_42 : f32 to vector<16x128xf32>
    %107 = arith.mulf %106, %103 : vector<16x128xf32>
    %108 = arith.select %105, %103, %107 : vector<16x128xi1>, vector<16x128xf32>
    %109 = arith.truncf %108 : vector<16x128xf32> to vector<16x128xbf16>
    %cst_43 = arith.constant dense<0.000000e+00> : vector<16x128xf32>
    %110 = tpu.matmul %12, %109, %cst_43 {dimension_numbers = #tpu.dot_dimension_numbers<[1], [0], [0], [1], [0, 0, 1, 1], [], []>} : vector<16x16xbf16>, vector<16x128xbf16>, vector<16x128xf32> -> vector<16x128xf32>
    %111 = vector.broadcast %9 : vector<16x1xf32> to vector<16x128xf32>
    %112 = arith.addf %110, %111 : vector<16x128xf32>
    %c0_44 = arith.constant 0 : index
    %c0_45 = arith.constant 0 : index
    %113 = vector.load %arg1[%c0_44, %c0_45] : memref<16x128xf32, #tpu.memory_space<vmem>>, vector<16x128xf32>
    %114 = arith.addf %112, %113 : vector<16x128xf32>
    %c0_46 = arith.constant 0 : index
    %c0_47 = arith.constant 0 : index
    %115 = vector.load %arg9[%c0_46, %c0_47] : memref<16x128xf32, #tpu.memory_space<vmem>>, vector<16x128xf32>
    tpu.vector_store %arg9[%c0_46, %c0_47], %114 {strides = array<i32>} : memref<16x128xf32, #tpu.memory_space<vmem>>, vector<16x128xf32>,
    return
  }
  func.func @transform_0(%arg0: i32) -> (i32, i32) {
    %c0_i32 = arith.constant 0 : i32
    %c0_i32_0 = arith.constant 0 : i32
    return %c0_i32, %arg0 : i32, i32
  }
  func.func @transform_1(%arg0: i32) -> (i32, i32) {
    %c0_i32 = arith.constant 0 : i32
    %c0_i32_0 = arith.constant 0 : i32
    %c0_i32_1 = arith.constant 0 : i32
    return %c0_i32, %c0_i32_0 : i32, i32
  }
  func.func @transform_2(%arg0: i32) -> (i32, i32) {
    %c0_i32 = arith.constant 0 : i32
    %c0_i32_0 = arith.constant 0 : i32
    %c0_i32_1 = arith.constant 0 : i32
    return %c0_i32, %c0_i32_0 : i32, i32
  }
  func.func @transform_3(%arg0: i32) -> (i32, i32) {
    %c0_i32 = arith.constant 0 : i32
    %c0_i32_0 = arith.constant 0 : i32
    %c0_i32_1 = arith.constant 0 : i32
    return %c0_i32, %c0_i32_0 : i32, i32
  }
  func.func @transform_4(%arg0: i32) -> (i32, i32) {
    %c0_i32 = arith.constant 0 : i32
    %c0_i32_0 = arith.constant 0 : i32
    %c0_i32_1 = arith.constant 0 : i32
    return %c0_i32, %c0_i32_0 : i32, i32
  }
  func.func @transform_5(%arg0: i32) -> (i32, i32) {
    %c0_i32 = arith.constant 0 : i32
    %c0_i32_0 = arith.constant 0 : i32
    %c0_i32_1 = arith.constant 0 : i32
    return %c0_i32, %c0_i32_0 : i32, i32
  }
  func.func @transform_6(%arg0: i32) -> (i32, i32) {
    %c0_i32 = arith.constant 0 : i32
    %c0_i32_0 = arith.constant 0 : i32
    %c0_i32_1 = arith.constant 0 : i32
    return %c0_i32, %c0_i32_0 : i32, i32
  }
  func.func @transform_7(%arg0: i32) -> (i32, i32, i32) {
    %c0_i32 = arith.constant 0 : i32
    %c0_i32_0 = arith.constant 0 : i32
    %c0_i32_1 = arith.constant 0 : i32
    %c0_i32_2 = arith.constant 0 : i32
    return %c0_i32, %c0_i32_0, %c0_i32_1 : i32, i32, i32
  }
  func.func @transform_8(%arg0: i32) -> (i32, i32) {
    %c0_i32 = arith.constant 0 : i32
    %c0_i32_0 = arith.constant 0 : i32
    return %c0_i32, %arg0 : i32, i32
  }
}

</mosaic_0001>

<bundles_post_ra>
// kernel: tpu_custom_call.1
= control target key start
LH: loop header
LB: loop body
LE: loop exit
PB: predicated region body
PF: predicated region fallthrough
CT: control target
= control target key end

     0   :  { %13 = vsyncpa [#allocation4], 0  ;;  %s1731_s0 = inlined_call_operand.vmem [shape: f32[16,256], index: 0, kind: input, shape index: {}]   ;;  %s1732_s1 = inlined_call_operand.vmem [shape: f32[16,9], index: 1, kind: input, shape index: {}]   ;;  %s1733_s2 = inlined_call_operand.vmem [shape: bf16[16,16], index: 2, kind: input, shape index: {}]   ;;  %s1734_s3 = inlined_call_operand.vmem [shape: bf16[16,48], index: 3, kind: input, shape index: {}]   ;;  %s1735_s4 = inlined_call_operand.vmem [shape: bf16[16,16], index: 4, kind: input, shape index: {}]   ;;  %s1736_s5 = inlined_call_operand.vmem [shape: f32[128,8], index: 5, kind: input, shape index: {}]   ;;  %s1737_s6 = inlined_call_operand.vmem [shape: f32[8,128], index: 6, kind: input, shape index: {}]   ;;  %s1738_s7 = inlined_call_operand.vmem [shape: f32[3,1,128], index: 7, kind: input, shape index: {}]   ;;  %s1739_s8 = inlined_call_operand.hbm [shape: f32[16,256], index: 8, kind: output, shape index: {}]  }
   0x1   :  { %15 = vsyncpa [#allocation4 + $0x1], 0  ;;  %s1346_s27 = smov 0   ;;  %s1348_s28 = smov 0  }
   0x2   :  { %s1350_s29 = smov 0   ;;  %s1352_s30 = smov 0  }
   0x3 LB: > { %s1097_s9 = sadd.s32 4294967295, %s1285_s30   ;;  %s1098_s10 = sadd.s32 4294967294, %s1285_s30   ;;  %s1285_s30 = sphi %s1352_s30, %s1745_s30   ;;  %s1281_s29 = sphi %s1350_s29, %s1744_s29   ;;  %s1277_s28 = sphi %s1348_s28, %s1743_s28   ;;  %s1273_s27 = sphi %s1346_s27, %s1742_s27  }
   0x4   : > { %s1369_s11 = sadd.s32 1, %s1285_s30   ;;  %s28_s12 = sadd.s32 1, %s1281_s29 }
   0x5   : > { %s25_s13 = ssub.s32 %s1285_s30, %s1369_s11  ;;  %p35_p0 = scmp.ne.s32.totalorder %s1281_s29, %s1277_s28 }
   0x6   : > { %p26_p1 = scmp.eq.s32.totalorder %s25_s13, 0  ;;  %p36_p2 = scmp.eq.s32.totalorder %s1285_s30, 0 }
   0x7   : > { %p212_p3 = scmp.eq.s32.totalorder %s1097_s9, 1  ;;  %p217_p4 = scmp.ne.s32.totalorder %s1277_s28, %s1273_s27 }
   0x8   : > { %s1382_s14 = scalar_select %p26_p1, %s1281_s29, %s28_s12  }
   0x9   : > { %p37_p5 = por %p36_p2, %p35_p0  ;;  %p1384_p6 = por %p212_p3, %p35_p0 }
   0xa   : > { %p218_p7 = scmp.eq.s32.totalorder %s1098_s10, 1  ;;  %p1100_p9 = scmp.ge.s32.totalorder %s1285_s30, 2 }
   0xc   : > { %p1388_p8 = por %p218_p7, %p217_p4  ;;  %255 = sbr.rel (%p1100_p9) target bundleno = 23 (0x17), region = 44 }
  0x11   : > { %258 = sbr.rel (!%p37_p5) target bundleno = 23 (0x17), region = 48  ;;  %s260_s17 = sand.u32 (%p37_p5), 1, %s1281_s29  }
  0x12   : > { %s1102_s18 = sshll.u32 (%p37_p5), %s1285_s30, 3  ;;  %s1101_s19 = sshll.u32 (%p37_p5), %s260_s17, 4 }
  0x13   : > { %s264_s22 = scalar_lea.vmem (%p37_p5), %s1731_s0, %s1102_s18  ;;  %s262_s23 = scalar_lea.vmem (%p37_p5), [#allocation2], %s1101_s19 }
  0x14   : > { %v295_v0 = vld [vmem:[%s264_s22] sm:$0xff] (%p37_p5)  ;;  %v297_v1 = vld [vmem:[%s264_s22 + $0x10] sm:$0xff] (%p37_p5) }
  0x15   : > { %296 = vst [vmem:[%s262_s23] sm:$0xff] (%p37_p5), %v295_v0 }
  0x16   : > { %298 = vst [vmem:[%s262_s23 + $0x8] sm:$0xff] %v297_v1 }
  0x17 PF: > { %p1103_p10 = scmp.ge.s32.totalorder %s1285_s30, 1  ;;  %p303_p11 = scmp.lt.s32.totalorder %s1285_s30, 3 }
  0x19   : > { %p304_p12 = pnand %p1103_p10, %p303_p11 }
  0x1a   : > { %s310_s22 = sand.u32 (!%p304_p12), 1, %s1277_s28   ;;  %s1292_s17 = smov (!%p304_p12), 2  }
  0x1b   : > { %307 = sbr.rel (%p304_p12) target bundleno = 1542 (0x606), region = 86  ;;  %s1492_s25 = sshll.u32 (!%p304_p12), %s310_s22, 4 }
  0x1c   : > { %s312_s19 = scalar_lea.vmem (!%p304_p12), [#allocation2], %s1492_s25  ;;  %s1293_s18 = smov (!%p304_p12), 1  }
  0x1d   : > { %s1135_s13 = sshll.u32 (!%p304_p12), %s1097_s9, 3  ;;  %s342_s20 = scalar_lea.vmem (!%p304_p12), [#allocation3], %s1492_s25 }
  0x1e   : > { %s1027_s21 = sshll.u32 (!%p304_p12), %s342_s20, 4  ;;  %s1016_s9 = scalar_lea.sflag (!%p304_p12), [#allocation4], %s310_s22  ;;  %s1028_s21 = int_to_ptr.vmem [resolvable:$true] %s1027_s21 }
  0x1f   : > { %s1243_s12 = scalar_lea.hbm (!%p304_p12), %s1739_s8, 32 }
  0x20   : > { %v1405_v2 = vld [vmem:[%s1736_s5 + $0x78] sm:$0xff]  ;;  %v1410_v3 = vld [vmem:[%s1736_s5 + $0x70] sm:$0xff]  ;;  %v1417_v4 = vld [vmem:[%s1736_s5 + $0x68] sm:$0xff]  ;;  %v1287_v10 = vmov 0   ;;  %v1288_v11 = vmov 1   ;;  %vm471_vm3 = vcmask 64512  }
  0x21   : > { %371 = vmatpush.msra.mxu0 %v1405_v2  ;;  %396 = vmatpush.msra.mxu1 %v1405_v2  ;;  %v1424_v5 = vld [vmem:[%s1736_s5 + $0x60] sm:$0xff]  ;;  %v1431_v6 = vld [vmem:[%s1736_s5 + $0x58] sm:$0xff]  ;;  %v1438_v7 = vld [vmem:[%s1736_s5 + $0x50] sm:$0xff]  ;;  %v1289_v63 = vmov 2   ;;  %vm554_vm9 = vcmask 130048  }
  0x22   : > { %v1445_v8 = vld [vmem:[%s1732_s1 + $0x8] sm:$0xff]  ;;  %1195 = vset.pattern.permute.xlu0 %v1287_v10  ;;  %1196 = vset.pattern.permute.xlu1 %v1288_v11  ;;  %v1457_v12 = vld [vmem:[%s1732_s1] sm:$0xff]  ;;  %v1471_v14 = vld [vmem:[%s1736_s5 + $0x38] sm:$0xff] }
  0x23   : > { %372 = vmatpush.msra.mxu0 %v1410_v3  ;;  %397 = vmatpush.msra.mxu1 %v1410_v3  ;;  %v1450_v9 = vld [vmem:[%s1736_s5 + $0x48] sm:$0xff]  ;;  %v1462_v13 = vld [vmem:[%s1736_s5 + $0x40] sm:$0xff]  ;;  %v1478_v15 = vld [vmem:[%s1736_s5 + $0x30] sm:$0xff] }
  0x24   : > { %454 = vperm.xlu0 %1195, %v1445_v8   ;;  %462 = vperm.xlu1 %1196, %v1457_v12   ;;  %v1486_v16 = vld [vmem:[%s1736_s5 + $0x28] sm:$0xff]  ;;  %v1497_v17 = vld [vmem:[%s1736_s5 + $0x20] sm:$0xff]  ;;  %v1506_v18 = vld [vmem:[%s1736_s5 + $0x18] sm:$0xff] }
  0x25   : > { %373 = vmatpush.msra.mxu0 %v1417_v4  ;;  %398 = vmatpush.msra.mxu1 %v1417_v4  ;;  %v1513_v19 = vld [vmem:[%s1736_s5 + $0x10] sm:$0xff]  ;;  %v1523_v21 = vld [vmem:[%s1736_s5 + $0x8] sm:$0xff]  ;;  %v1530_v22 = vld [vmem:[%s1736_s5] sm:$0xff] }
  0x26   : > { %v1518_v20 = vld [vmem:[%s312_s19] sm:$0xff]  ;;  %v1539_v24 = vld [vmem:[%s312_s19 + $0x8] sm:$0xff]  ;;  %1197 = vset.pattern.permute.xlu2 %v1289_v63  ;;  %s1026_s19 = scalar_lea.hbm %s1739_s8, %s1135_s13 }
  0x27   : > { %374 = vmatpush.msra.mxu0 %v1424_v5  ;;  %399 = vmatpush.msra.mxu1 %v1424_v5  ;;  %v394_v23 = vmul.f32 %v1518_v20, %v1518_v20  ;;  %v395_v25 = vmul.f32 %v1539_v24, %v1539_v24  ;;  %v1547_v26 = vld [vmem:[%s1737_s6] sm:$0xff]  ;;  %s1029_s23 = sshll.u32 %s1026_s19, 4  ;;  %s1030_s23 = int_to_ptr.hbm [resolvable:$true] %s1029_s23 }
  0x28   : > { %493 = vmatpush.msra.mxu2 %v1547_v26  ;;  %1141 = vmatpush.msra.mxu3 %v1547_v26  ;;  %s1237_s24 = sshra.s32 %s1030_s23, 4  ;;  %s1238_s24 = int_to_ptr.hbm [resolvable:$true] %s1237_s24 }
  0x29   : > { %375 = vmatpush.msra.mxu0 %v1431_v6  ;;  %400 = vmatpush.msra.mxu1 %v1431_v6  ;;  %s1239_s26 = scalar_lea.hbm %s1238_s24, 16  ;;  %p1244_p2 = scmp.lt.s32.totalorder %s1238_s24, %s1739_s8 }
  0x2a   : > { %524 = vmatpush.msrb.mxu3 %v1547_v26  ;;  %542 = vperm.xlu2 %1197, %v1457_v12   ;;  %p1240_p13 = scmp.ne.s32.totalorder %s1238_s24, %s1239_s26  ;;  %p1245_p3 = scmp.lt.s32.totalorder %s1243_s12, %s1239_s26 }
  0x2b   : > { %376 = vmatpush.msra.mxu0 %v1438_v7  ;;  %401 = vmatpush.msra.mxu1 %v1438_v7 }
  0x2c   : > { %449 = vperm.xlu0 %1195, %v1457_v12   ;;  %466 = vperm.xlu1 %1196, %v1445_v8   ;;  %p1241_p0 = pnand %p1240_p13, %p1384_p6  ;;  %p1246_p4 = por %p1245_p3, %p1244_p2 }
  0x2d   : > { %377 = vmatpush.msra.mxu0 %v1450_v9  ;;  %402 = vmatpush.msra.mxu1 %v1450_v9 }
  0x2e   : > { %p1242_p1 = pneg %p1241_p0 }
  0x2f   : > { %378 = vmatpush.msra.mxu0 %v1462_v13  ;;  %403 = vmatpush.msra.mxu1 %v1462_v13 }
  0x30   : > { %p1247_p5 = pnand %p1246_p4, %p1242_p1 }
  0x31   : > { %379 = vmatpush.msra.mxu0 %v1471_v14  ;;  %404 = vmatpush.msra.mxu1 %v1471_v14 }
  0x32   : > { %546 = vperm.xlu2 %1197, %v1445_v8  }
  0x33   : > { %380 = vmatpush.msra.mxu0 %v1478_v15  ;;  %405 = vmatpush.msra.mxu1 %v1478_v15 }
  0x35   : > { %381 = vmatpush.msra.mxu0 %v1486_v16  ;;  %406 = vmatpush.msra.mxu1 %v1486_v16 }
  0x37   : > { %382 = vmatpush.msra.mxu0 %v1497_v17  ;;  %407 = vmatpush.msra.mxu1 %v1497_v17 }
  0x39   : > { %383 = vmatpush.msra.mxu0 %v1506_v18  ;;  %408 = vmatpush.msra.mxu1 %v1506_v18 }
  0x3b   : > { %384 = vmatpush.msra.mxu0 %v1513_v19  ;;  %409 = vmatpush.msra.mxu1 %v1513_v19 }
  0x3d   : > { %385 = vmatpush.msra.mxu0 %v1523_v21  ;;  %410 = vmatpush.msra.mxu1 %v1523_v21 }
  0x3f   : > { %386 = vmatpush.msra.mxu0 %v1530_v22  ;;  %411 = vmatpush.msra.mxu1 %v1530_v22 }
  0x40   : > { %387 = vmatmul.f32.vlgmr.msra.gmra.mxu0 %v1518_v20  ;;  %412 = vmatmul.f32.vlgmr.msra.gmra.mxu1 %v394_v23 }
  0x41   : > { %691 = vmatpush.msrb.mxu0 %v1547_v26  ;;  %722 = vmatpush.msrb.mxu1 %v1547_v26 }
  0x43   : > { %814 = vmatpush.msra.mxu0 %v1405_v2  ;;  %839 = vmatpush.msra.mxu1 %v1405_v2 }
  0x45   : > { %815 = vmatpush.msra.mxu0 %v1410_v3  ;;  %840 = vmatpush.msra.mxu1 %v1410_v3 }
  0x47   : > { %816 = vmatpush.msra.mxu0 %v1417_v4  ;;  %841 = vmatpush.msra.mxu1 %v1417_v4 }
  0x48   : > { %390 = vmatmul.f32.gmra.mxu0 %v1539_v24  ;;  %415 = vmatmul.f32.gmra.mxu1 %v395_v25 }
  0x49   : > { %817 = vmatpush.msra.mxu0 %v1424_v5  ;;  %842 = vmatpush.msra.mxu1 %v1424_v5 }
  0x4b   : > { %818 = vmatpush.msra.mxu0 %v1431_v6  ;;  %843 = vmatpush.msra.mxu1 %v1431_v6 }
  0x4d   : > { %819 = vmatpush.msra.mxu0 %v1438_v7  ;;  %844 = vmatpush.msra.mxu1 %v1438_v7 }
  0x4f   : > { %820 = vmatpush.msra.mxu0 %v1450_v9  ;;  %845 = vmatpush.msra.mxu1 %v1450_v9 }
  0x51   : > { %821 = vmatpush.msra.mxu0 %v1462_v13  ;;  %846 = vmatpush.msra.mxu1 %v1462_v13 }
  0x53   : > { %822 = vmatpush.msra.mxu0 %v1471_v14  ;;  %847 = vmatpush.msra.mxu1 %v1471_v14 }
  0x55   : > { %823 = vmatpush.msra.mxu0 %v1478_v15  ;;  %848 = vmatpush.msra.mxu1 %v1478_v15 }
  0x57   : > { %824 = vmatpush.msra.mxu0 %v1486_v16  ;;  %849 = vmatpush.msra.mxu1 %v1486_v16 }
  0x59   : > { %825 = vmatpush.msra.mxu0 %v1497_v17  ;;  %850 = vmatpush.msra.mxu1 %v1497_v17 }
  0x5b   : > { %826 = vmatpush.msra.mxu0 %v1506_v18  ;;  %851 = vmatpush.msra.mxu1 %v1506_v18 }
  0x5d   : > { %827 = vmatpush.msra.mxu0 %v1513_v19  ;;  %852 = vmatpush.msra.mxu1 %v1513_v19 }
  0x5f   : > { %828 = vmatpush.msra.mxu0 %v1523_v21  ;;  %853 = vmatpush.msra.mxu1 %v1523_v21 }
  0x61   : > { %829 = vmatpush.msra.mxu0 %v1530_v22  ;;  %854 = vmatpush.msra.mxu1 %v1530_v22 }
  0x96   : > { %v455_v38 = vpop.permute.xlu0 %454  ;;  %v463_v57 = vpop.permute.xlu1 %462 }
  0x9e   : > { %v450_v47 = vpop.permute.xlu0 %449  ;;  %v467_v61 = vpop.permute.xlu1 %466 }
  0xbd   : > { %v1556_v27 = vpop.f32.mrf.mxu0  ;;  %v413_v28 = vpop.f32.mrf.mxu1 }
  0xbe   : > { %v419_v29 = vmul.f32 %v1556_v27, %v1556_v27 }
  0xc0   : > { %v421_v30 = vsub.f32 %v413_v28, %v419_v29 }
  0xc2   : > { %v423_v31 = vmax.f32 %v421_v30, 0.0 }
  0xc4   : > { %v425_v32 = vadd.f32 1e-05, %v423_v31 }
  0xc5   : > { %v1568_v33 = vpop.f32.mrf.mxu0  ;;  %v416_v34 = vpop.f32.mrf.mxu1 }
  0xc6   : > { %1211 = vrsqrt.f32 %v425_v32  ;;  %v420_v35 = vmul.f32 %v1568_v33, %v1568_v33  ;;  %vm433_vm1 = vweird.f32 %v425_v32 }
  0xc8   : > { %v422_v36 = vsub.f32 %v416_v34, %v420_v35  ;;  %v1138_v34 = vld [vmem:[%s1733_s2] sm:$0xff] }
  0xca   : > { %v424_v37 = vmax.f32 %v422_v36, 0.0 }
  0xcc   : > { %v1212_v39 = vpop.eup %1211  ;;  %v426_v40 = vadd.f32 1e-05, %v424_v37 }
  0xcd   : > { %v428_v41 = vmul.f32 %v1212_v39, %v425_v32  ;;  %vm434_vm0 = vweird.f32 %v1212_v39 }
  0xce   : > { %1213 = vrsqrt.f32 %v426_v40  ;;  %vm435_vm2 = vmor %vm433_vm1, %vm434_vm0  ;;  %vm443_vm5 = vweird.f32 %v426_v40 }
  0xcf   : > { %v429_v42 = vmul.f32 %v1212_v39, %v428_v41 }
  0xd1   : > { %v430_v43 = vmul.f32 0.5, %v429_v42 }
  0xd3   : > { %v431_v44 = vsub.f32 1.5, %v430_v43 }
  0xd4   : > { %v1214_v45 = vpop.eup %1213 }
  0xd5   : > { %v438_v46 = vmul.f32 %v1214_v45, %v426_v40  ;;  %v432_v48 = vmul.f32 %v1212_v39, %v431_v44  ;;  %vm444_vm4 = vweird.f32 %v1214_v45 }
  0xd6   : > { %vm445_vm6 = vmor %vm443_vm5, %vm444_vm4 }
  0xd7   : > { %v439_v49 = vmul.f32 %v1214_v45, %v438_v46  ;;  %v436_v50 = vsel %vm435_vm2, %v1212_v39, %v432_v48  ;;  %vm796_vm2 = vcmask 392192  }
  0xd8   : > { %v457_v51 = vmul.f32 %v450_v47, %v436_v50 }
  0xd9   : > { %v440_v52 = vmul.f32 0.5, %v439_v49 }
  0xda   : > { %1106 = vmatmul.msk.f32.vlgmr.msra.gmra.mxu2 %vm471_vm3, %v457_v51  ;;  %v459_v58 = vmul.f32 %v457_v51, %v1556_v27 }
  0xdb   : > { %v441_v53 = vsub.f32 1.5, %v440_v52 }
  0xdc   : > { %v469_v59 = vsub.f32 %v463_v57, %v459_v58 }
  0xdd   : > { %v442_v54 = vmul.f32 %v1214_v45, %v441_v53 }
  0xdf   : > { %v446_v55 = vsel %vm445_vm6, %v1214_v45, %v442_v54 }
  0xe0   : > { %v458_v56 = vmul.f32 %v455_v38, %v446_v55 }
  0xe2   : > { %1107 = vmatmul.msk.f32.vlgmr.msra.gmra.mxu3 %vm471_vm3, %v458_v56  ;;  %v460_v60 = vmul.f32 %v458_v56, %v1568_v33 }
  0xe3   : > { %572 = vmatpush.msra.mxu3 %v1405_v2 }
  0xe4   : > { %v470_v62 = vsub.f32 %v467_v61, %v460_v60 }
  0xe5   : > { %573 = vmatpush.msra.mxu3 %v1410_v3 }
  0xe7   : > { %574 = vmatpush.msra.mxu3 %v1417_v4 }
  0xe9   : > { %575 = vmatpush.msra.mxu3 %v1424_v5 }
  0xea   : > { %1108 = vmatmul.msk.f32.vlgmr.msrb.gmra.mxu3 %vm471_vm3, %v469_v59 }
  0xeb   : > { %576 = vmatpush.msra.mxu3 %v1431_v6 }
  0xed   : > { %577 = vmatpush.msra.mxu3 %v1438_v7 }
  0xef   : > { %578 = vmatpush.msra.mxu3 %v1450_v9 }
  0xf1   : > { %579 = vmatpush.msra.mxu3 %v1462_v13 }
  0xf2   : > { %1109 = vmatmul.msk.f32.gmra.mxu3 %vm471_vm3, %v470_v62 }
  0xf3   : > { %580 = vmatpush.msra.mxu3 %v1471_v14 }
  0xf5   : > { %581 = vmatpush.msra.mxu3 %v1478_v15 }
  0xf7   : > { %582 = vmatpush.msra.mxu3 %v1486_v16 }
  0xf9   : > { %583 = vmatpush.msra.mxu3 %v1497_v17 }
  0xfb   : > { %584 = vmatpush.msra.mxu3 %v1506_v18 }
  0xfd   : > { %585 = vmatpush.msra.mxu3 %v1513_v19 }
  0xff   : > { %586 = vmatpush.msra.mxu3 %v1523_v21 }
 0x101   : > { %587 = vmatpush.msra.mxu3 %v1530_v22 }
 0x15d   : > { %v495_v1 = vpop.f32.mrf.mxu2 }
 0x15e   : > { %v501_v11 = vmul.f32 %v495_v1, %v1518_v20 }
 0x165   : > { %v498_v0 = vpop.f32.mrf.mxu3 }
 0x166   : > { %v502_v25 = vmul.f32 %v498_v0, %v1539_v24 }
 0x16d   : > { %v526_v10 = vpop.f32.mrf.mxu3 }
 0x16e   : > { %v532_v23 = vadd.f32 %v526_v10, %v501_v11 }
 0x170   : > { %v536_v28 = vmul.f32 0.01, %v532_v23  ;;  %vm534_vm7 = vcmp.ge.f32.partialorder %v532_v23, 0.0 }
 0x172   : > { %v538_v31 = vsel %vm534_vm7, %v532_v23, %v536_v28 }
 0x175   : > { %v529_v27 = vpop.f32.mrf.mxu3 }
 0x176   : > { %v533_v29 = vadd.f32 %v529_v27, %v502_v25 }
 0x178   : > { %v537_v30 = vmul.f32 0.01, %v533_v29  ;;  %vm535_vm8 = vcmp.ge.f32.partialorder %v533_v29, 0.0 }
 0x17a   : > { %v539_v32 = vsel %vm535_vm8, %v533_v29, %v537_v30 }
 0x17b   : > { %v540_v33 = vpack.c.bf16 %v539_v32, %v538_v31 }
 0x17d   : > { %565 = vmatpush.bf16.msrb.mxu2 %v540_v33 }
 0x180   : > { %1114 = vmatmul.msk.bf16.vlgmr.msrb.gmra.mxu2 %vm554_vm9, %v1138_v34 }
 0x181   : > { %597 = vmatpush.msra.mxu2 %v1405_v2  ;;  %v1290_v2 = vmov 4  }
 0x182   : > { %1199 = vset.pattern.permute.xlu1 %v1290_v2 }
 0x183   : > { %598 = vmatpush.msra.mxu2 %v1410_v3  ;;  %v1291_v3 = vmov 3   ;;  %661 = vperm.xlu1 %1199, %v1457_v12  }
 0x184   : > { %1198 = vset.pattern.permute.xlu0 %v1291_v3  ;;  %1200 = vset.pattern.permute.xlu2 %v1291_v3 }
 0x185   : > { %599 = vmatpush.msra.mxu2 %v1417_v4  ;;  %649 = vperm.xlu0 %1198, %v1457_v12   ;;  %v543_v4 = vpop.permute.xlu2 %542 }
 0x186   : > { %653 = vperm.xlu2 %1200, %v1445_v8  }
 0x187   : > { %600 = vmatpush.msra.mxu2 %v1424_v5 }
 0x189   : > { %601 = vmatpush.msra.mxu2 %v1431_v6 }
 0x18b   : > { %602 = vmatpush.msra.mxu2 %v1438_v7  ;;  %665 = vperm.xlu1 %1199, %v1445_v8  }
 0x18d   : > { %603 = vmatpush.msra.mxu2 %v1450_v9  ;;  %v547_v9 = vpop.permute.xlu2 %546 }
 0x18f   : > { %604 = vmatpush.msra.mxu2 %v1462_v13 }
 0x191   : > { %605 = vmatpush.msra.mxu2 %v1471_v14 }
 0x193   : > { %606 = vmatpush.msra.mxu2 %v1478_v15 }
 0x195   : > { %607 = vmatpush.msra.mxu2 %v1486_v16 }
 0x197   : > { %608 = vmatpush.msra.mxu2 %v1497_v17 }
 0x199   : > { %609 = vmatpush.msra.mxu2 %v1506_v18 }
 0x19b   : > { %610 = vmatpush.msra.mxu2 %v1513_v19 }
 0x19d   : > { %611 = vmatpush.msra.mxu2 %v1523_v21 }
 0x19f   : > { %612 = vmatpush.msra.mxu2 %v1530_v22 }
 0x1a1   : > { %933 = vmatpush.msrb.mxu2 %v1547_v26 }
 0x1e0   : > { %v654_v58 = vpop.permute.xlu2 %653 }
 0x1f5   : > { %v662_v53 = vpop.permute.xlu1 %661 }
 0x1f7   : > { %v650_v48 = vpop.permute.xlu0 %649 }
 0x1fd   : > { %v666_v63 = vpop.permute.xlu1 %665 }
 0x203   : > { %v567_v5 = vpop.f32.mrf.mxu2 }
 0x204   : > { %v568_v6 = vadd.f32 %v567_v5, %v543_v4 }
 0x206   : > { %v595_v7 = vmul.f32 %v568_v6, %v568_v6  ;;  %588 = vmatmul.f32.vlgmr.msra.gmra.mxu3 %v568_v6 }
 0x208   : > { %613 = vmatmul.f32.vlgmr.msra.gmra.mxu2 %v595_v7 }
 0x20b   : > { %v569_v13 = vpop.f32.mrf.mxu2 }
 0x20c   : > { %v1645_v14 = vadd.f32 %v569_v13, %v547_v9  ;;  %v1209_v9 = vld [vmem:[%s1738_s7 + $0x1] ss:$0 sm:$0xff] }
 0x20e   : > { %591 = vmatmul.f32.gmra.mxu3 %v1645_v14  ;;  %v596_v15 = vmul.f32 %v1645_v14, %v1645_v14 }
 0x210   : > { %616 = vmatmul.f32.gmra.mxu2 %v596_v15  ;;  %v1210_v15 = vld [vmem:[%s1738_s7] ss:$0 sm:$0xff] }
 0x289   : > { %v589_v16 = vpop.f32.mrf.mxu3 }
 0x28a   : > { %v620_v17 = vmul.f32 %v589_v16, %v589_v16 }
 0x28b   : > { %v614_v18 = vpop.f32.mrf.mxu2 }
 0x28c   : > { %v622_v19 = vsub.f32 %v614_v18, %v620_v17 }
 0x28e   : > { %v624_v21 = vmax.f32 %v622_v19, 0.0 }
 0x290   : > { %v626_v22 = vadd.f32 1e-05, %v624_v21 }
 0x291   : > { %v592_v35 = vpop.f32.mrf.mxu3 }
 0x292   : > { %1215 = vrsqrt.f32 %v626_v22  ;;  %v621_v36 = vmul.f32 %v592_v35, %v592_v35  ;;  %vm634_vm11 = vweird.f32 %v626_v22 }
 0x293   : > { %v617_v37 = vpop.f32.mrf.mxu2 }
 0x294   : > { %v623_v38 = vsub.f32 %v617_v37, %v621_v36 }
 0x296   : > { %v625_v39 = vmax.f32 %v623_v38, 0.0 }
 0x298   : > { %v1216_v40 = vpop.eup %1215  ;;  %v627_v41 = vadd.f32 1e-05, %v625_v39 }
 0x299   : > { %v629_v42 = vmul.f32 %v1216_v40, %v626_v22  ;;  %vm635_vm10 = vweird.f32 %v1216_v40 }
 0x29a   : > { %1217 = vrsqrt.f32 %v627_v41  ;;  %vm636_vm12 = vmor %vm634_vm11, %vm635_vm10  ;;  %vm644_vm14 = vweird.f32 %v627_v41 }
 0x29b   : > { %v630_v43 = vmul.f32 %v1216_v40, %v629_v42 }
 0x29d   : > { %v631_v44 = vmul.f32 0.5, %v630_v43 }
 0x29f   : > { %v632_v45 = vsub.f32 1.5, %v631_v44  ;;  %v1139_v44 = vld [vmem:[%s1734_s3] sm:$0xff] }
 0x2a0   : > { %v1218_v46 = vpop.eup %1217 }
 0x2a1   : > { %v639_v47 = vmul.f32 %v1218_v46, %v627_v41  ;;  %v633_v49 = vmul.f32 %v1216_v40, %v632_v45  ;;  %vm645_vm13 = vweird.f32 %v1218_v46  ;;  %v1295_v45 = vmov 7  }
 0x2a2   : > { %vm646_vm15 = vmor %vm644_vm14, %vm645_vm13 }
 0x2a3   : > { %v640_v50 = vmul.f32 %v1218_v46, %v639_v47  ;;  %v637_v51 = vsel %vm636_vm12, %v1216_v40, %v633_v49 }
 0x2a4   : > { %v656_v52 = vmul.f32 %v650_v48, %v637_v51 }
 0x2a5   : > { %v641_v54 = vmul.f32 0.5, %v640_v50 }
 0x2a6   : > { %v658_v55 = vmul.f32 %v656_v52, %v589_v16  ;;  %1115 = vmatmul.msk.f32.vlgmr.msrb.gmra.mxu0 %vm471_vm3, %v656_v52 }
 0x2a7   : > { %v642_v56 = vsub.f32 1.5, %v641_v54 }
 0x2a8   : > { %v668_v57 = vsub.f32 %v662_v53, %v658_v55 }
 0x2a9   : > { %v643_v59 = vmul.f32 %v1218_v46, %v642_v56 }
 0x2aa   : > { %1117 = vmatmul.msk.f32.vlgmr.msrb.gmra.mxu1 %vm471_vm3, %v668_v57 }
 0x2ab   : > { %v647_v60 = vsel %vm646_vm15, %v1218_v46, %v643_v59  ;;  %v1296_v46 = vmov 6  }
 0x2ac   : > { %v657_v61 = vmul.f32 %v654_v58, %v647_v60  ;;  %1203 = vset.pattern.permute.xlu2 %v1296_v46 }
 0x2ae   : > { %v659_v62 = vmul.f32 %v657_v61, %v592_v35  ;;  %1116 = vmatmul.msk.f32.gmra.mxu0 %vm471_vm3, %v657_v61 }
 0x2b0   : > { %v669_v0 = vsub.f32 %v666_v63, %v659_v62 }
 0x2b2   : > { %1118 = vmatmul.msk.f32.gmra.mxu1 %vm471_vm3, %v669_v0 }
 0x323   : > { %v693_v1 = vpop.f32.mrf.mxu0 }
 0x324   : > { %v699_v10 = vmul.f32 %v693_v1, %v568_v6  ;;  %v1294_v6 = vmov 5  }
 0x325   : > { %1201 = vset.pattern.permute.xlu0 %v1294_v6  ;;  %1202 = vset.pattern.permute.xlu1 %v1294_v6 }
 0x327   : > { %v724_v11 = vpop.f32.mrf.mxu1 }
 0x328   : > { %v730_v23 = vadd.f32 %v724_v11, %v699_v10 }
 0x32a   : > { %v734_v25 = vmul.f32 0.01, %v730_v23  ;;  %vm732_vm0 = vcmp.ge.f32.partialorder %v730_v23, 0.0 }
 0x32b   : > { %v696_v27 = vpop.f32.mrf.mxu0 }
 0x32c   : > { %v736_v28 = vsel %vm732_vm0, %v730_v23, %v734_v25  ;;  %v700_v29 = vmul.f32 %v696_v27, %v1645_v14 }
 0x32d   : > { %738 = vrot.lane.b32.xlu1 %v736_v28, %s1292_s17  ;;  %750 = vrot.lane.b32.xlu2 %v736_v28, %s1293_s18  ;;  %v763_v33 = vpack.c.bf16 %v736_v28, %v736_v28 }
 0x32f   : > { %v727_v30 = vpop.f32.mrf.mxu1  ;;  %v779_v3 = vunpack.c.l.b16 %v763_v33 }
 0x330   : > { %v731_v31 = vadd.f32 %v727_v30, %v700_v29 }
 0x332   : > { %v735_v32 = vmul.f32 0.01, %v731_v31  ;;  %vm733_vm1 = vcmp.ge.f32.partialorder %v731_v31, 0.0 }
 0x334   : > { %v737_v34 = vsel %vm733_vm1, %v731_v31, %v735_v32 }
 0x335   : > { %740 = vrot.lane.b32.xlu2 %v737_v34, %s1292_s17  ;;  %v764_v2 = vpack.c.bf16 %v737_v34, %v737_v34  ;;  %752 = vrot.lane.b32.xlu0 %v737_v34, %s1293_s18 }
 0x336   : > { %788 = vperm.xlu1 %1202, %v1445_v8  }
 0x337   : > { %v780_v4 = vunpack.c.l.b16 %v764_v2 }
 0x339   : > { %v781_v5 = vpack.c.b16 %v780_v4, %v779_v3 }
 0x33b   : > { %805 = vmatpush.bf16.msrb.mxu3 %v781_v5 }
 0x33d   : > { %784 = vperm.xlu0 %1201, %v1457_v12   ;;  %891 = vperm.xlu2 %1203, %v1457_v12  }
 0x33e   : > { %1204 = vset.pattern.permute.xlu1 %v1295_v45 }
 0x33f   : > { %903 = vperm.xlu1 %1204, %v1457_v12  }
 0x345   : > { %1205 = vset.pattern.permute.xlu0 %v1295_v45  ;;  %895 = vperm.xlu2 %1203, %v1445_v8  }
 0x346   : > { %907 = vperm.xlu0 %1205, %v1445_v8  }
 0x387   : > { %v751_v7 = vpop.permute.xlu2 %750 }
 0x388   : > { %v759_v14 = vmul.f32 %v1209_v9, %v751_v7 }
 0x38a   : > { %v761_v19 = vpack.c.bf16 %v759_v14, %v759_v14 }
 0x38c   : > { %v773_v37 = vunpack.c.l.b16 %v761_v19 }
 0x38f   : > { %v741_v16 = vpop.permute.xlu2 %740 }
 0x390   : > { %v747_v21 = vmul.f32 %v1210_v15, %v741_v16 }
 0x392   : > { %v749_v38 = vpack.c.bf16 %v747_v21, %v747_v21 }
 0x394   : > { %v768_v42 = vunpack.c.l.b16 %v749_v38 }
 0x397   : > { %v892_v30 = vpop.permute.xlu2 %891 }
 0x39f   : > { %v739_v13 = vpop.permute.xlu1 %738 }
 0x3a0   : > { %v746_v17 = vmul.f32 %v1210_v15, %v739_v13 }
 0x3a2   : > { %v748_v35 = vpack.c.bf16 %v746_v17, %v746_v17 }
 0x3a4   : > { %v767_v40 = vunpack.c.l.b16 %v748_v35 }
 0x3a6   : > { %v769_v43 = vpack.c.b16 %v768_v42, %v767_v40 }
 0x3a7   : > { %v753_v18 = vpop.permute.xlu0 %752 }
 0x3a8   : > { %v760_v22 = vmul.f32 %v1209_v9, %v753_v18  ;;  %v789_v50 = vpop.permute.xlu1 %788  ;;  %v896_v9 = vpop.permute.xlu2 %895  ;;  %v1297_v18 = vmov 8  }
 0x3a9   : > { %1206 = vset.pattern.permute.xlu1 %v1297_v18  ;;  %1207 = vset.pattern.permute.xlu2 %v1297_v18 }
 0x3aa   : > { %v762_v36 = vpack.c.bf16 %v760_v22, %v760_v22  ;;  %982 = vperm.xlu1 %1206, %v1457_v12   ;;  %986 = vperm.xlu2 %1207, %v1445_v8  }
 0x3ab   : > { %1208 = vset.pattern.permute.xlu0 %v1297_v18 }
 0x3ac   : > { %v774_v39 = vunpack.c.l.b16 %v762_v36 }
 0x3ae   : > { %v775_v41 = vpack.c.b16 %v774_v39, %v773_v37 }
 0x3af   : > { %v785_v47 = vpop.permute.xlu0 %784 }
 0x3b0   : > { %806 = vmatpush.bf16.msrb.mxu3 %v775_v41 }
 0x3b1   : > { %v904_v3 = vpop.permute.xlu1 %903 }
 0x3b4   : > { %807 = vmatpush.bf16.msrb.mxu3 %v769_v43  ;;  %v1140_v43 = vld [vmem:[%s1735_s4] sm:$0xff] }
 0x3b7   : > { %1124 = vmatmul.msk.bf16.vlgmr.msrb.gmra.mxu3 %vm796_vm2, %v1139_v44 }
 0x3b8   : > { %964 = vmatpush.msra.mxu3 %v1547_v26  ;;  %v908_v15 = vpop.permute.xlu0 %907 }
 0x41c   : > { %v983_v44 = vpop.permute.xlu1 %982 }
 0x43a   : > { %v809_v48 = vpop.f32.mrf.mxu3 }
 0x43b   : > { %v1671_v49 = vadd.f32 %v809_v48, %v785_v47  ;;  %v987_v48 = vpop.permute.xlu2 %986 }
 0x43d   : > { %v837_v26 = vmul.f32 %v1671_v49, %v1671_v49  ;;  %830 = vmatmul.f32.vlgmr.msra.gmra.mxu0 %v1671_v49 }
 0x43f   : > { %855 = vmatmul.f32.vlgmr.msra.gmra.mxu1 %v837_v26 }
 0x442   : > { %v811_v51 = vpop.f32.mrf.mxu3 }
 0x443   : > { %v1676_v52 = vadd.f32 %v811_v51, %v789_v50 }
 0x445   : > { %833 = vmatmul.f32.gmra.mxu0 %v1676_v52  ;;  %v838_v53 = vmul.f32 %v1676_v52, %v1676_v52 }
 0x447   : > { %858 = vmatmul.f32.gmra.mxu1 %v838_v53 }
 0x4ba   : > { %v831_v54 = vpop.f32.mrf.mxu0 }
 0x4bb   : > { %v862_v55 = vmul.f32 %v831_v54, %v831_v54 }
 0x4bc   : > { %v856_v56 = vpop.f32.mrf.mxu1 }
 0x4bd   : > { %v864_v57 = vsub.f32 %v856_v56, %v862_v55 }
 0x4bf   : > { %v866_v58 = vmax.f32 %v864_v57, 0.0 }
 0x4c1   : > { %v868_v59 = vadd.f32 1e-05, %v866_v58 }
 0x4c2   : > { %v834_v60 = vpop.f32.mrf.mxu0 }
 0x4c3   : > { %1219 = vrsqrt.f32 %v868_v59  ;;  %v863_v61 = vmul.f32 %v834_v60, %v834_v60  ;;  %vm876_vm5 = vweird.f32 %v868_v59 }
 0x4c4   : > { %v859_v62 = vpop.f32.mrf.mxu1 }
 0x4c5   : > { %v865_v63 = vsub.f32 %v859_v62, %v863_v61 }
 0x4c7   : > { %v867_v0 = vmax.f32 %v865_v63, 0.0 }
 0x4c9   : > { %v1220_v1 = vpop.eup %1219  ;;  %v869_v10 = vadd.f32 1e-05, %v867_v0 }
 0x4ca   : > { %v871_v11 = vmul.f32 %v1220_v1, %v868_v59  ;;  %vm877_vm4 = vweird.f32 %v1220_v1 }
 0x4cb   : > { %1221 = vrsqrt.f32 %v869_v10  ;;  %vm878_vm6 = vmor %vm876_vm5, %vm877_vm4  ;;  %vm886_vm8 = vweird.f32 %v869_v10 }
 0x4cc   : > { %v872_v23 = vmul.f32 %v1220_v1, %v871_v11 }
 0x4ce   : > { %v873_v25 = vmul.f32 0.5, %v872_v23 }
 0x4d0   : > { %v874_v27 = vsub.f32 1.5, %v873_v25 }
 0x4d1   : > { %v1222_v28 = vpop.eup %1221 }
 0x4d2   : > { %v881_v29 = vmul.f32 %v1222_v28, %v869_v10  ;;  %v875_v31 = vmul.f32 %v1220_v1, %v874_v27  ;;  %vm887_vm7 = vweird.f32 %v1222_v28 }
 0x4d3   : > { %vm888_vm10 = vmor %vm886_vm8, %vm887_vm7 }
 0x4d4   : > { %v882_v32 = vmul.f32 %v1222_v28, %v881_v29  ;;  %v879_v33 = vsel %vm878_vm6, %v1220_v1, %v875_v31 }
 0x4d5   : > { %v898_v34 = vmul.f32 %v892_v30, %v879_v33 }
 0x4d6   : > { %v883_v2 = vmul.f32 0.5, %v882_v32 }
 0x4d7   : > { %1125 = vmatmul.msk.f32.vlgmr.msrb.gmra.mxu2 %vm471_vm3, %v898_v34  ;;  %v900_v4 = vmul.f32 %v898_v34, %v831_v54 }
 0x4d8   : > { %v884_v5 = vsub.f32 1.5, %v883_v2 }
 0x4d9   : > { %v910_v6 = vsub.f32 %v904_v3, %v900_v4 }
 0x4da   : > { %v885_v7 = vmul.f32 %v1222_v28, %v884_v5 }
 0x4db   : > { %1127 = vmatmul.msk.f32.vlgmr.msra.gmra.mxu3 %vm471_vm3, %v910_v6 }
 0x4dc   : > { %v889_v13 = vsel %vm888_vm10, %v1222_v28, %v885_v7 }
 0x4dd   : > { %v899_v14 = vmul.f32 %v896_v9, %v889_v13 }
 0x4df   : > { %1126 = vmatmul.msk.f32.gmra.mxu2 %vm471_vm3, %v899_v14  ;;  %v901_v16 = vmul.f32 %v899_v14, %v834_v60 }
 0x4e1   : > { %v911_v17 = vsub.f32 %v908_v15, %v901_v16 }
 0x4e3   : > { %1128 = vmatmul.msk.f32.gmra.mxu3 %vm471_vm3, %v911_v17 }
 0x55a   : > { %v935_v19 = vpop.f32.mrf.mxu2 }
 0x55b   : > { %v941_v22 = vmul.f32 %v935_v19, %v1671_v49 }
 0x55e   : > { %v966_v21 = vpop.f32.mrf.mxu3 }
 0x55f   : > { %v972_v36 = vadd.f32 %v966_v21, %v941_v22 }
 0x561   : > { %v976_v39 = vmul.f32 0.01, %v972_v36  ;;  %vm974_vm3 = vcmp.ge.f32.partialorder %v972_v36, 0.0 }
 0x562   : > { %v938_v35 = vpop.f32.mrf.mxu2 }
 0x563   : > { %v942_v37 = vmul.f32 %v938_v35, %v1676_v52  ;;  %v978_v12 = vsel %vm974_vm3, %v972_v36, %v976_v39 }
 0x566   : > { %v969_v38 = vpop.f32.mrf.mxu3 }
 0x567   : > { %v973_v40 = vadd.f32 %v969_v38, %v942_v37 }
 0x569   : > { %vm975_vm11 = vcmp.ge.f32.partialorder %v973_v40, 0.0  ;;  %v977_v41 = vmul.f32 0.01, %v973_v40 }
 0x56b   : > { %v979_v42 = vsel %vm975_vm11, %v973_v40, %v977_v41 }
 0x56c   : > { %v980_v8 = vpack.c.bf16 %v979_v42, %v978_v12 }
 0x56e   : > { %1004 = vmatpush.bf16.msra.mxu2 %v980_v8 }
 0x571   : > { %1133 = vmatmul.msk.bf16.vlgmr.msra.gmra.mxu2 %vm554_vm9, %v1140_v43 }
 0x5f4   : > { %v1006_v45 = vpop.f32.mrf.mxu2 }
 0x5f5   : > { %v1007_v46 = vadd.f32 %v1006_v45, %v983_v44 }
 0x5f7   : > { %v1011_v47 = vadd.f32 %v1007_v46, %v1518_v20 }
 0x5f9   : > { %1013 = vst [vmem:[%s342_s20] sm:$0xff] %v1011_v47 }
 0x5fc   : > { %v1008_v49 = vpop.f32.mrf.mxu2 }
 0x5fd   : > { %v1009_v26 = vadd.f32 %v1008_v49, %v987_v48 }
 0x5ff   : > { %v1012_v50 = vadd.f32 %v1009_v26, %v1539_v24 }
 0x601   : > { %1014 = vst [vmem:[%s342_s20 + $0x8] sm:$0xff] %v1012_v50 }
 0x602   : > { %1250 = shalt.err (!%p1247_p5)
}
 0x603   : > { %s1298_s22 = smov 128   ;;  %s1299_s18 = smov 256  }
 0x604   : > { %s1300_s19 = smov 8  }
 0x605   : > { %1142 = dma.vmem_to_hbm [thread:$0]  (%p1384_p6), %s1028_s21, 256, %s1030_s23, %s1016_s9, %s1298_s22, %s1299_s18, %s1300_s19  }
 0x606 PF: > { %s1044_s20 = sand.u32 1, %s1273_s27   ;;  %p1145_p7 = pnand %p1100_p9, %p1388_p8 }
 0x607   : > { %s1045_s24 = scalar_lea.sflag [#allocation4], %s1044_s20 }
 0x608   : > { %p1146_p10 = pneg %p1145_p7 }
 0x60a   : > { %1268 = dma.done.wait (%p1146_p10), %s1045_s24, 256  }
 0x60b   : > { %1270 = vsyncadd (%p1146_p10), %s1045_s24, 4294967040  ;;  %p18_p11 = scmp.ge.s32.totalorder %s1369_s11, 4   ;;  %s1742_s27 = smov %s1277_s28 }
 0x60c   : > { %s1743_s28 = smov %s1281_s29  ;;  %s1744_s29 = smov %s1382_s14 }
 0x60d   : > { %s1745_s30 = smov %s1369_s11  ;;  %20 = sbr.rel (!%p18_p11) target bundleno = 3 (0x3), region = 131 }
 0x612   :  { %1051 = vsyncpa [#allocation4], 1 }
 0x613   :  { %1053 = vsyncpa [#allocation4 + $0x1], 1 }

</bundles_post_ra>
